<compile_context>
chip_gen: v5e
topology: v5e:2x2
jax: 0.10.0
libtpu: 0.0.40
codegen_flags: <defaults>
</compile_context>

<pallas_src>
import functools

import jax
import jax.numpy as jnp
from jax import lax
from jax.experimental import pallas as pl
from jax.experimental.pallas import tpu as pltpu  # noqa: F401  (TPU backend)


# ---------------------------------------------------------------------------
# Single fused kernel (whole problem fits in VMEM -> single block, no grid)
# ---------------------------------------------------------------------------

def _fused_forward_kernel(x_ref, wenc_t_ref, benc_ref, wig_t_ref, at_ref,
                          wdec_t_ref, o_ref, *, max_iter):
    # 1) encoder: U[N, H] = X[N, C] @ WencT[C, H] + b[1, H]
    u = (jnp.dot(x_ref[...], wenc_t_ref[...],
                 preferred_element_type=jnp.float32) + benc_ref[...])

    # 2) dropout: eval mode -> identity

    # 3) contractive rescale of the implicit-graph weight (in-kernel; Frobenius
    #    norm is transpose-invariant so scaling W^T == scaling W).
    a_t = at_ref[...]
    w_t = wig_t_ref[...]
    norm_w = jnp.sqrt(jnp.sum(w_t * w_t))
    norm_a = jnp.sqrt(jnp.sum(a_t * a_t))
    w_t = (0.9 / (norm_w * norm_a + 1e-6)) * w_t

    # 4) implicit graph fixed point, [N, H] layout (H on the lane axis):
    #       Z = ReLU(A^T @ Z @ W^T + U)
    #    which is the transpose of the reference  Z' = ReLU(W @ Z' @ A + U').
    def body(_, z):
        az = jnp.dot(a_t, z, preferred_element_type=jnp.float32)
        pre = jnp.dot(az, w_t, preferred_element_type=jnp.float32) + u
        return jnp.maximum(pre, 0.0)

    z = lax.fori_loop(0, max_iter, body, jnp.maximum(u, 0.0), unroll=True)

    # 5) ReLU + 6) decoder (bias-free): O[N, O] = ReLU(Z) @ WdecT[H, O]
    o_ref[...] = jnp.dot(jnp.maximum(z, 0.0), wdec_t_ref[...],
                         preferred_element_type=jnp.float32)


# ---------------------------------------------------------------------------
# Host-side glue (one-time preprocessing + a single pallas_call per forward)
# ---------------------------------------------------------------------------

def build_dense_adjacency_t(edge_index, edge_weight, num_nodes):
    """Densify the (static) graph once; return A^T for the [N, H] formulation."""
    a = jnp.zeros((num_nodes, num_nodes), jnp.float32).at[
        edge_index[0], edge_index[1]
    ].set(edge_weight)
    return a.T


def prepare_params(params):
    """One-time transposes / reshapes so the forward has zero extra HLOs."""
    return {
        "w_enc_t": jnp.asarray(params["w_enc"].T, jnp.float32),   # [C, H]
        "b_enc":   jnp.asarray(params["b_enc"].reshape(1, -1), jnp.float32),
        "w_ig_t":  jnp.asarray(params["w_ig"].T, jnp.float32),    # [H, H]
        "w_dec_t": jnp.asarray(params["w_dec"].T, jnp.float32),   # [H, O]
    }


@functools.partial(jax.jit, static_argnames=("max_iter",))
def model_forward(x, a_dense_t, prepared, *, max_iter):
    n = x.shape[0]
    out_channels = prepared["w_dec_t"].shape[1]
    return pl.pallas_call(
        functools.partial(_fused_forward_kernel, max_iter=max_iter),
        out_shape=jax.ShapeDtypeStruct((n, out_channels), jnp.float32),
    )(
        x,
        prepared["w_enc_t"],
        prepared["b_enc"],
        prepared["w_ig_t"],
        a_dense_t,
        prepared["w_dec_t"],
    )


# ---------------------------------------------------------------------------
# Main
# ---------------------------------------------------------------------------

if __name__ == "__main__":
    # Small, deterministic problem sizes.
    num_nodes = 16
    in_channels = 8
    hidden_channels = 32
    out_channels = 4
    max_iter = 20

    key = jax.random.PRNGKey(0)
    k_x, k_we, k_be, k_wi, k_wd = jax.random.split(key, 5)

    # Node features.
    x = jax.random.normal(k_x, (num_nodes, in_channels), dtype=jnp.float32)

    # Deterministic ring graph (both directions), symmetric weights.
    src = jnp.arange(num_nodes, dtype=jnp.int32)
    dst = (src + 1) % num_nodes
    edge_index = jnp.stack(
        [jnp.concatenate([src, dst]), jnp.concatenate([dst, src])], axis=0
    )                                                          # [2, 2N]
    edge_weight = jnp.full((2 * num_nodes,), 0.5, dtype=jnp.float32)

    # Deterministic parameter init (PyTorch Linear weight layout: [out, in]).
    params = {
        "w_enc": 0.1 * jax.random.normal(
            k_we, (hidden_channels, in_channels), dtype=jnp.float32),
        "b_enc": 0.1 * jax.random.normal(
            k_be, (hidden_channels,), dtype=jnp.float32),
        "w_ig": jax.random.normal(
            k_wi, (hidden_channels, hidden_channels), dtype=jnp.float32),
        "w_dec": 0.1 * jax.random.normal(
            k_wd, (out_channels, hidden_channels), dtype=jnp.float32),
    }

    # One-time preprocessing for the static graph / static parameters.
    a_dense_t = build_dense_adjacency_t(edge_index, edge_weight, num_nodes)
    prepared = prepare_params(params)

    out = model_forward(x, a_dense_t, prepared, max_iter=max_iter)
    out = jax.block_until_ready(out)

    assert out.shape == (num_nodes, out_channels)
    assert bool(jnp.all(jnp.isfinite(out)))
    print("KERNEL_OK")
</pallas_src>

<mosaic_0001>
module attributes {stable_mosaic.version = 11 : i64} {
  func.func @_fused_forward_kernel(%arg0: memref<16x8xf32, #tpu.memory_space<vmem>>, %arg1: memref<8x32xf32, #tpu.memory_space<vmem>>, %arg2: memref<1x32xf32, #tpu.memory_space<vmem>>, %arg3: memref<32x32xf32, #tpu.memory_space<vmem>>, %arg4: memref<16x16xf32, #tpu.memory_space<vmem>>, %arg5: memref<32x4xf32, #tpu.memory_space<vmem>>, %arg6: memref<16x4xf32, #tpu.memory_space<vmem>>) attributes {dimension_semantics = [], scalar_prefetch = 0 : i64, scratch_operands = 0 : i64, tpu.core_type = #tpu.core_type<tc>} {
    %c0 = arith.constant 0 : index
    %c0_0 = arith.constant 0 : index
    %0 = vector.load %arg0[%c0, %c0_0] : memref<16x8xf32, #tpu.memory_space<vmem>>, vector<16x8xf32>
    %c0_1 = arith.constant 0 : index
    %c0_2 = arith.constant 0 : index
    %1 = vector.load %arg1[%c0_1, %c0_2] : memref<8x32xf32, #tpu.memory_space<vmem>>, vector<8x32xf32>
    %cst = arith.constant dense<0.000000e+00> : vector<16x32xf32>
    %2 = tpu.matmul %0, %1, %cst {dimension_numbers = #tpu.dot_dimension_numbers<[1], [0], [0], [1], [0, 0, 1, 1], [], []>} : vector<16x8xf32>, vector<8x32xf32>, vector<16x32xf32> -> vector<16x32xf32>
    %c0_3 = arith.constant 0 : index
    %c0_4 = arith.constant 0 : index
    %3 = vector.load %arg2[%c0_3, %c0_4] : memref<1x32xf32, #tpu.memory_space<vmem>>, vector<1x32xf32>
    %4 = vector.broadcast %3 : vector<1x32xf32> to vector<16x32xf32>
    %5 = arith.addf %2, %4 : vector<16x32xf32>
    %c0_5 = arith.constant 0 : index
    %c0_6 = arith.constant 0 : index
    %6 = vector.load %arg4[%c0_5, %c0_6] : memref<16x16xf32, #tpu.memory_space<vmem>>, vector<16x16xf32>
    %c0_7 = arith.constant 0 : index
    %c0_8 = arith.constant 0 : index
    %7 = vector.load %arg3[%c0_7, %c0_8] : memref<32x32xf32, #tpu.memory_space<vmem>>, vector<32x32xf32>
    %8 = arith.mulf %7, %7 : vector<32x32xf32>
    %9 = vector.shape_cast %8 : vector<32x32xf32> to vector<1x32x32xf32>
    %cst_9 = arith.constant dense<0.000000e+00> : vector<1xf32>
    %10 = vector.multi_reduction <add>, %9, %cst_9 [1, 2] : vector<1x32x32xf32> to vector<1xf32>
    %11 = vector.shape_cast %10 : vector<1xf32> to vector<1x1x1xf32>
    %12 = vector.extract %11[0, 0, 0] : f32 from vector<1x1x1xf32>
    %13 = math.sqrt %12 : f32
    %14 = arith.mulf %6, %6 : vector<16x16xf32>
    %15 = vector.shape_cast %14 : vector<16x16xf32> to vector<1x16x16xf32>
    %cst_10 = arith.constant dense<0.000000e+00> : vector<1xf32>
    %16 = vector.multi_reduction <add>, %15, %cst_10 [1, 2] : vector<1x16x16xf32> to vector<1xf32>
    %17 = vector.shape_cast %16 : vector<1xf32> to vector<1x1x1xf32>
    %18 = vector.extract %17[0, 0, 0] : f32 from vector<1x1x1xf32>
    %19 = math.sqrt %18 : f32
    %20 = arith.mulf %13, %19 : f32
    %cst_11 = arith.constant 9.99999997E-7 : f32
    %21 = arith.addf %20, %cst_11 : f32
    %cst_12 = arith.constant 0.899999976 : f32
    %22 = arith.divf %cst_12, %21 : f32
    %23 = vector.broadcast %22 : f32 to vector<32x32xf32>
    %24 = arith.mulf %23, %7 : vector<32x32xf32>
    %cst_13 = arith.constant 0.000000e+00 : f32
    %25 = vector.broadcast %cst_13 : f32 to vector<16x32xf32>
    %26 = arith.maximumf %5, %25 : vector<16x32xf32>
    %c0_i32 = arith.constant 0 : i32
    %cst_14 = arith.constant dense<0.000000e+00> : vector<16x32xf32>
    %27 = tpu.matmul %6, %26, %cst_14 {dimension_numbers = #tpu.dot_dimension_numbers<[1], [0], [0], [1], [0, 0, 1, 1], [], []>} : vector<16x16xf32>, vector<16x32xf32>, vector<16x32xf32> -> vector<16x32xf32>
    %cst_15 = arith.constant dense<0.000000e+00> : vector<16x32xf32>
    %28 = tpu.matmul %27, %24, %cst_15 {dimension_numbers = #tpu.dot_dimension_numbers<[1], [0], [0], [1], [0, 0, 1, 1], [], []>} : vector<16x32xf32>, vector<32x32xf32>, vector<16x32xf32> -> vector<16x32xf32>
    %29 = arith.addf %28, %5 : vector<16x32xf32>
    %cst_16 = arith.constant 0.000000e+00 : f32
    %30 = vector.broadcast %cst_16 : f32 to vector<16x32xf32>
    %31 = arith.maximumf %29, %30 : vector<16x32xf32>
    %c1_i32 = arith.constant 1 : i32
    %cst_17 = arith.constant dense<0.000000e+00> : vector<16x32xf32>
    %32 = tpu.matmul %6, %31, %cst_17 {dimension_numbers = #tpu.dot_dimension_numbers<[1], [0], [0], [1], [0, 0, 1, 1], [], []>} : vector<16x16xf32>, vector<16x32xf32>, vector<16x32xf32> -> vector<16x32xf32>
    %cst_18 = arith.constant dense<0.000000e+00> : vector<16x32xf32>
    %33 = tpu.matmul %32, %24, %cst_18 {dimension_numbers = #tpu.dot_dimension_numbers<[1], [0], [0], [1], [0, 0, 1, 1], [], []>} : vector<16x32xf32>, vector<32x32xf32>, vector<16x32xf32> -> vector<16x32xf32>
    %34 = arith.addf %33, %5 : vector<16x32xf32>
    %cst_19 = arith.constant 0.000000e+00 : f32
    %35 = vector.broadcast %cst_19 : f32 to vector<16x32xf32>
    %36 = arith.maximumf %34, %35 : vector<16x32xf32>
    %c2_i32 = arith.constant 2 : i32
    %cst_20 = arith.constant dense<0.000000e+00> : vector<16x32xf32>
    %37 = tpu.matmul %6, %36, %cst_20 {dimension_numbers = #tpu.dot_dimension_numbers<[1], [0], [0], [1], [0, 0, 1, 1], [], []>} : vector<16x16xf32>, vector<16x32xf32>, vector<16x32xf32> -> vector<16x32xf32>
    %cst_21 = arith.constant dense<0.000000e+00> : vector<16x32xf32>
    %38 = tpu.matmul %37, %24, %cst_21 {dimension_numbers = #tpu.dot_dimension_numbers<[1], [0], [0], [1], [0, 0, 1, 1], [], []>} : vector<16x32xf32>, vector<32x32xf32>, vector<16x32xf32> -> vector<16x32xf32>
    %39 = arith.addf %38, %5 : vector<16x32xf32>
    %cst_22 = arith.constant 0.000000e+00 : f32
    %40 = vector.broadcast %cst_22 : f32 to vector<16x32xf32>
    %41 = arith.maximumf %39, %40 : vector<16x32xf32>
    %c3_i32 = arith.constant 3 : i32
    %cst_23 = arith.constant dense<0.000000e+00> : vector<16x32xf32>
    %42 = tpu.matmul %6, %41, %cst_23 {dimension_numbers = #tpu.dot_dimension_numbers<[1], [0], [0], [1], [0, 0, 1, 1], [], []>} : vector<16x16xf32>, vector<16x32xf32>, vector<16x32xf32> -> vector<16x32xf32>
    %cst_24 = arith.constant dense<0.000000e+00> : vector<16x32xf32>
    %43 = tpu.matmul %42, %24, %cst_24 {dimension_numbers = #tpu.dot_dimension_numbers<[1], [0], [0], [1], [0, 0, 1, 1], [], []>} : vector<16x32xf32>, vector<32x32xf32>, vector<16x32xf32> -> vector<16x32xf32>
    %44 = arith.addf %43, %5 : vector<16x32xf32>
    %cst_25 = arith.constant 0.000000e+00 : f32
    %45 = vector.broadcast %cst_25 : f32 to vector<16x32xf32>
    %46 = arith.maximumf %44, %45 : vector<16x32xf32>
    %c4_i32 = arith.constant 4 : i32
    %cst_26 = arith.constant dense<0.000000e+00> : vector<16x32xf32>
    %47 = tpu.matmul %6, %46, %cst_26 {dimension_numbers = #tpu.dot_dimension_numbers<[1], [0], [0], [1], [0, 0, 1, 1], [], []>} : vector<16x16xf32>, vector<16x32xf32>, vector<16x32xf32> -> vector<16x32xf32>
    %cst_27 = arith.constant dense<0.000000e+00> : vector<16x32xf32>
    %48 = tpu.matmul %47, %24, %cst_27 {dimension_numbers = #tpu.dot_dimension_numbers<[1], [0], [0], [1], [0, 0, 1, 1], [], []>} : vector<16x32xf32>, vector<32x32xf32>, vector<16x32xf32> -> vector<16x32xf32>
    %49 = arith.addf %48, %5 : vector<16x32xf32>
    %cst_28 = arith.constant 0.000000e+00 : f32
    %50 = vector.broadcast %cst_28 : f32 to vector<16x32xf32>
    %51 = arith.maximumf %49, %50 : vector<16x32xf32>
    %c5_i32 = arith.constant 5 : i32
    %cst_29 = arith.constant dense<0.000000e+00> : vector<16x32xf32>
    %52 = tpu.matmul %6, %51, %cst_29 {dimension_numbers = #tpu.dot_dimension_numbers<[1], [0], [0], [1], [0, 0, 1, 1], [], []>} : vector<16x16xf32>, vector<16x32xf32>, vector<16x32xf32> -> vector<16x32xf32>
    %cst_30 = arith.constant dense<0.000000e+00> : vector<16x32xf32>
    %53 = tpu.matmul %52, %24, %cst_30 {dimension_numbers = #tpu.dot_dimension_numbers<[1], [0], [0], [1], [0, 0, 1, 1], [], []>} : vector<16x32xf32>, vector<32x32xf32>, vector<16x32xf32> -> vector<16x32xf32>
    %54 = arith.addf %53, %5 : vector<16x32xf32>
    %cst_31 = arith.constant 0.000000e+00 : f32
    %55 = vector.broadcast %cst_31 : f32 to vector<16x32xf32>
    %56 = arith.maximumf %54, %55 : vector<16x32xf32>
    %c6_i32 = arith.constant 6 : i32
    %cst_32 = arith.constant dense<0.000000e+00> : vector<16x32xf32>
    %57 = tpu.matmul %6, %56, %cst_32 {dimension_numbers = #tpu.dot_dimension_numbers<[1], [0], [0], [1], [0, 0, 1, 1], [], []>} : vector<16x16xf32>, vector<16x32xf32>, vector<16x32xf32> -> vector<16x32xf32>
    %cst_33 = arith.constant dense<0.000000e+00> : vector<16x32xf32>
    %58 = tpu.matmul %57, %24, %cst_33 {dimension_numbers = #tpu.dot_dimension_numbers<[1], [0], [0], [1], [0, 0, 1, 1], [], []>} : vector<16x32xf32>, vector<32x32xf32>, vector<16x32xf32> -> vector<16x32xf32>
    %59 = arith.addf %58, %5 : vector<16x32xf32>
    %cst_34 = arith.constant 0.000000e+00 : f32
    %60 = vector.broadcast %cst_34 : f32 to vector<16x32xf32>
    %61 = arith.maximumf %59, %60 : vector<16x32xf32>
    %c7_i32 = arith.constant 7 : i32
    %cst_35 = arith.constant dense<0.000000e+00> : vector<16x32xf32>
    %62 = tpu.matmul %6, %61, %cst_35 {dimension_numbers = #tpu.dot_dimension_numbers<[1], [0], [0], [1], [0, 0, 1, 1], [], []>} : vector<16x16xf32>, vector<16x32xf32>, vector<16x32xf32> -> vector<16x32xf32>
    %cst_36 = arith.constant dense<0.000000e+00> : vector<16x32xf32>
    %63 = tpu.matmul %62, %24, %cst_36 {dimension_numbers = #tpu.dot_dimension_numbers<[1], [0], [0], [1], [0, 0, 1, 1], [], []>} : vector<16x32xf32>, vector<32x32xf32>, vector<16x32xf32> -> vector<16x32xf32>
    %64 = arith.addf %63, %5 : vector<16x32xf32>
    %cst_37 = arith.constant 0.000000e+00 : f32
    %65 = vector.broadcast %cst_37 : f32 to vector<16x32xf32>
    %66 = arith.maximumf %64, %65 : vector<16x32xf32>
    %c8_i32 = arith.constant 8 : i32
    %cst_38 = arith.constant dense<0.000000e+00> : vector<16x32xf32>
    %67 = tpu.matmul %6, %66, %cst_38 {dimension_numbers = #tpu.dot_dimension_numbers<[1], [0], [0], [1], [0, 0, 1, 1], [], []>} : vector<16x16xf32>, vector<16x32xf32>, vector<16x32xf32> -> vector<16x32xf32>
    %cst_39 = arith.constant dense<0.000000e+00> : vector<16x32xf32>
    %68 = tpu.matmul %67, %24, %cst_39 {dimension_numbers = #tpu.dot_dimension_numbers<[1], [0], [0], [1], [0, 0, 1, 1], [], []>} : vector<16x32xf32>, vector<32x32xf32>, vector<16x32xf32> -> vector<16x32xf32>
    %69 = arith.addf %68, %5 : vector<16x32xf32>
    %cst_40 = arith.constant 0.000000e+00 : f32
    %70 = vector.broadcast %cst_40 : f32 to vector<16x32xf32>
    %71 = arith.maximumf %69, %70 : vector<16x32xf32>
    %c9_i32 = arith.constant 9 : i32
    %cst_41 = arith.constant dense<0.000000e+00> : vector<16x32xf32>
    %72 = tpu.matmul %6, %71, %cst_41 {dimension_numbers = #tpu.dot_dimension_numbers<[1], [0], [0], [1], [0, 0, 1, 1], [], []>} : vector<16x16xf32>, vector<16x32xf32>, vector<16x32xf32> -> vector<16x32xf32>
    %cst_42 = arith.constant dense<0.000000e+00> : vector<16x32xf32>
    %73 = tpu.matmul %72, %24, %cst_42 {dimension_numbers = #tpu.dot_dimension_numbers<[1], [0], [0], [1], [0, 0, 1, 1], [], []>} : vector<16x32xf32>, vector<32x32xf32>, vector<16x32xf32> -> vector<16x32xf32>
    %74 = arith.addf %73, %5 : vector<16x32xf32>
    %cst_43 = arith.constant 0.000000e+00 : f32
    %75 = vector.broadcast %cst_43 : f32 to vector<16x32xf32>
    %76 = arith.maximumf %74, %75 : vector<16x32xf32>
    %c10_i32 = arith.constant 10 : i32
    %cst_44 = arith.constant dense<0.000000e+00> : vector<16x32xf32>
    %77 = tpu.matmul %6, %76, %cst_44 {dimension_numbers = #tpu.dot_dimension_numbers<[1], [0], [0], [1], [0, 0, 1, 1], [], []>} : vector<16x16xf32>, vector<16x32xf32>, vector<16x32xf32> -> vector<16x32xf32>
    %cst_45 = arith.constant dense<0.000000e+00> : vector<16x32xf32>
    %78 = tpu.matmul %77, %24, %cst_45 {dimension_numbers = #tpu.dot_dimension_numbers<[1], [0], [0], [1], [0, 0, 1, 1], [], []>} : vector<16x32xf32>, vector<32x32xf32>, vector<16x32xf32> -> vector<16x32xf32>
    %79 = arith.addf %78, %5 : vector<16x32xf32>
    %cst_46 = arith.constant 0.000000e+00 : f32
    %80 = vector.broadcast %cst_46 : f32 to vector<16x32xf32>
    %81 = arith.maximumf %79, %80 : vector<16x32xf32>
    %c11_i32 = arith.constant 11 : i32
    %cst_47 = arith.constant dense<0.000000e+00> : vector<16x32xf32>
    %82 = tpu.matmul %6, %81, %cst_47 {dimension_numbers = #tpu.dot_dimension_numbers<[1], [0], [0], [1], [0, 0, 1, 1], [], []>} : vector<16x16xf32>, vector<16x32xf32>, vector<16x32xf32> -> vector<16x32xf32>
    %cst_48 = arith.constant dense<0.000000e+00> : vector<16x32xf32>
    %83 = tpu.matmul %82, %24, %cst_48 {dimension_numbers = #tpu.dot_dimension_numbers<[1], [0], [0], [1], [0, 0, 1, 1], [], []>} : vector<16x32xf32>, vector<32x32xf32>, vector<16x32xf32> -> vector<16x32xf32>
    %84 = arith.addf %83, %5 : vector<16x32xf32>
    %cst_49 = arith.constant 0.000000e+00 : f32
    %85 = vector.broadcast %cst_49 : f32 to vector<16x32xf32>
    %86 = arith.maximumf %84, %85 : vector<16x32xf32>
    %c12_i32 = arith.constant 12 : i32
    %cst_50 = arith.constant dense<0.000000e+00> : vector<16x32xf32>
    %87 = tpu.matmul %6, %86, %cst_50 {dimension_numbers = #tpu.dot_dimension_numbers<[1], [0], [0], [1], [0, 0, 1, 1], [], []>} : vector<16x16xf32>, vector<16x32xf32>, vector<16x32xf32> -> vector<16x32xf32>
    %cst_51 = arith.constant dense<0.000000e+00> : vector<16x32xf32>
    %88 = tpu.matmul %87, %24, %cst_51 {dimension_numbers = #tpu.dot_dimension_numbers<[1], [0], [0], [1], [0, 0, 1, 1], [], []>} : vector<16x32xf32>, vector<32x32xf32>, vector<16x32xf32> -> vector<16x32xf32>
    %89 = arith.addf %88, %5 : vector<16x32xf32>
    %cst_52 = arith.constant 0.000000e+00 : f32
    %90 = vector.broadcast %cst_52 : f32 to vector<16x32xf32>
    %91 = arith.maximumf %89, %90 : vector<16x32xf32>
    %c13_i32 = arith.constant 13 : i32
    %cst_53 = arith.constant dense<0.000000e+00> : vector<16x32xf32>
    %92 = tpu.matmul %6, %91, %cst_53 {dimension_numbers = #tpu.dot_dimension_numbers<[1], [0], [0], [1], [0, 0, 1, 1], [], []>} : vector<16x16xf32>, vector<16x32xf32>, vector<16x32xf32> -> vector<16x32xf32>
    %cst_54 = arith.constant dense<0.000000e+00> : vector<16x32xf32>
    %93 = tpu.matmul %92, %24, %cst_54 {dimension_numbers = #tpu.dot_dimension_numbers<[1], [0], [0], [1], [0, 0, 1, 1], [], []>} : vector<16x32xf32>, vector<32x32xf32>, vector<16x32xf32> -> vector<16x32xf32>
    %94 = arith.addf %93, %5 : vector<16x32xf32>
    %cst_55 = arith.constant 0.000000e+00 : f32
    %95 = vector.broadcast %cst_55 : f32 to vector<16x32xf32>
    %96 = arith.maximumf %94, %95 : vector<16x32xf32>
    %c14_i32 = arith.constant 14 : i32
    %cst_56 = arith.constant dense<0.000000e+00> : vector<16x32xf32>
    %97 = tpu.matmul %6, %96, %cst_56 {dimension_numbers = #tpu.dot_dimension_numbers<[1], [0], [0], [1], [0, 0, 1, 1], [], []>} : vector<16x16xf32>, vector<16x32xf32>, vector<16x32xf32> -> vector<16x32xf32>
    %cst_57 = arith.constant dense<0.000000e+00> : vector<16x32xf32>
    %98 = tpu.matmul %97, %24, %cst_57 {dimension_numbers = #tpu.dot_dimension_numbers<[1], [0], [0], [1], [0, 0, 1, 1], [], []>} : vector<16x32xf32>, vector<32x32xf32>, vector<16x32xf32> -> vector<16x32xf32>
    %99 = arith.addf %98, %5 : vector<16x32xf32>
    %cst_58 = arith.constant 0.000000e+00 : f32
    %100 = vector.broadcast %cst_58 : f32 to vector<16x32xf32>
    %101 = arith.maximumf %99, %100 : vector<16x32xf32>
    %c15_i32 = arith.constant 15 : i32
    %cst_59 = arith.constant dense<0.000000e+00> : vector<16x32xf32>
    %102 = tpu.matmul %6, %101, %cst_59 {dimension_numbers = #tpu.dot_dimension_numbers<[1], [0], [0], [1], [0, 0, 1, 1], [], []>} : vector<16x16xf32>, vector<16x32xf32>, vector<16x32xf32> -> vector<16x32xf32>
    %cst_60 = arith.constant dense<0.000000e+00> : vector<16x32xf32>
    %103 = tpu.matmul %102, %24, %cst_60 {dimension_numbers = #tpu.dot_dimension_numbers<[1], [0], [0], [1], [0, 0, 1, 1], [], []>} : vector<16x32xf32>, vector<32x32xf32>, vector<16x32xf32> -> vector<16x32xf32>
    %104 = arith.addf %103, %5 : vector<16x32xf32>
    %cst_61 = arith.constant 0.000000e+00 : f32
    %105 = vector.broadcast %cst_61 : f32 to vector<16x32xf32>
    %106 = arith.maximumf %104, %105 : vector<16x32xf32>
    %c16_i32 = arith.constant 16 : i32
    %cst_62 = arith.constant dense<0.000000e+00> : vector<16x32xf32>
    %107 = tpu.matmul %6, %106, %cst_62 {dimension_numbers = #tpu.dot_dimension_numbers<[1], [0], [0], [1], [0, 0, 1, 1], [], []>} : vector<16x16xf32>, vector<16x32xf32>, vector<16x32xf32> -> vector<16x32xf32>
    %cst_63 = arith.constant dense<0.000000e+00> : vector<16x32xf32>
    %108 = tpu.matmul %107, %24, %cst_63 {dimension_numbers = #tpu.dot_dimension_numbers<[1], [0], [0], [1], [0, 0, 1, 1], [], []>} : vector<16x32xf32>, vector<32x32xf32>, vector<16x32xf32> -> vector<16x32xf32>
    %109 = arith.addf %108, %5 : vector<16x32xf32>
    %cst_64 = arith.constant 0.000000e+00 : f32
    %110 = vector.broadcast %cst_64 : f32 to vector<16x32xf32>
    %111 = arith.maximumf %109, %110 : vector<16x32xf32>
    %c17_i32 = arith.constant 17 : i32
    %cst_65 = arith.constant dense<0.000000e+00> : vector<16x32xf32>
    %112 = tpu.matmul %6, %111, %cst_65 {dimension_numbers = #tpu.dot_dimension_numbers<[1], [0], [0], [1], [0, 0, 1, 1], [], []>} : vector<16x16xf32>, vector<16x32xf32>, vector<16x32xf32> -> vector<16x32xf32>
    %cst_66 = arith.constant dense<0.000000e+00> : vector<16x32xf32>
    %113 = tpu.matmul %112, %24, %cst_66 {dimension_numbers = #tpu.dot_dimension_numbers<[1], [0], [0], [1], [0, 0, 1, 1], [], []>} : vector<16x32xf32>, vector<32x32xf32>, vector<16x32xf32> -> vector<16x32xf32>
    %114 = arith.addf %113, %5 : vector<16x32xf32>
    %cst_67 = arith.constant 0.000000e+00 : f32
    %115 = vector.broadcast %cst_67 : f32 to vector<16x32xf32>
    %116 = arith.maximumf %114, %115 : vector<16x32xf32>
    %c18_i32 = arith.constant 18 : i32
    %cst_68 = arith.constant dense<0.000000e+00> : vector<16x32xf32>
    %117 = tpu.matmul %6, %116, %cst_68 {dimension_numbers = #tpu.dot_dimension_numbers<[1], [0], [0], [1], [0, 0, 1, 1], [], []>} : vector<16x16xf32>, vector<16x32xf32>, vector<16x32xf32> -> vector<16x32xf32>
    %cst_69 = arith.constant dense<0.000000e+00> : vector<16x32xf32>
    %118 = tpu.matmul %117, %24, %cst_69 {dimension_numbers = #tpu.dot_dimension_numbers<[1], [0], [0], [1], [0, 0, 1, 1], [], []>} : vector<16x32xf32>, vector<32x32xf32>, vector<16x32xf32> -> vector<16x32xf32>
    %119 = arith.addf %118, %5 : vector<16x32xf32>
    %cst_70 = arith.constant 0.000000e+00 : f32
    %120 = vector.broadcast %cst_70 : f32 to vector<16x32xf32>
    %121 = arith.maximumf %119, %120 : vector<16x32xf32>
    %c19_i32 = arith.constant 19 : i32
    %cst_71 = arith.constant dense<0.000000e+00> : vector<16x32xf32>
    %122 = tpu.matmul %6, %121, %cst_71 {dimension_numbers = #tpu.dot_dimension_numbers<[1], [0], [0], [1], [0, 0, 1, 1], [], []>} : vector<16x16xf32>, vector<16x32xf32>, vector<16x32xf32> -> vector<16x32xf32>
    %cst_72 = arith.constant dense<0.000000e+00> : vector<16x32xf32>
    %123 = tpu.matmul %122, %24, %cst_72 {dimension_numbers = #tpu.dot_dimension_numbers<[1], [0], [0], [1], [0, 0, 1, 1], [], []>} : vector<16x32xf32>, vector<32x32xf32>, vector<16x32xf32> -> vector<16x32xf32>
    %124 = arith.addf %123, %5 : vector<16x32xf32>
    %cst_73 = arith.constant 0.000000e+00 : f32
    %125 = vector.broadcast %cst_73 : f32 to vector<16x32xf32>
    %126 = arith.maximumf %124, %125 : vector<16x32xf32>
    %cst_74 = arith.constant 0.000000e+00 : f32
    %127 = vector.broadcast %cst_74 : f32 to vector<16x32xf32>
    %128 = arith.maximumf %126, %127 : vector<16x32xf32>
    %c0_75 = arith.constant 0 : index
    %c0_76 = arith.constant 0 : index
    %129 = vector.load %arg5[%c0_75, %c0_76] : memref<32x4xf32, #tpu.memory_space<vmem>>, vector<32x4xf32>
    %cst_77 = arith.constant dense<0.000000e+00> : vector<16x4xf32>
    %130 = tpu.matmul %128, %129, %cst_77 {dimension_numbers = #tpu.dot_dimension_numbers<[1], [0], [0], [1], [0, 0, 1, 1], [], []>} : vector<16x32xf32>, vector<32x4xf32>, vector<16x4xf32> -> vector<16x4xf32>
    %c0_78 = arith.constant 0 : index
    %c0_79 = arith.constant 0 : index
    %131 = vector.load %arg6[%c0_78, %c0_79] : memref<16x4xf32, #tpu.memory_space<vmem>>, vector<16x4xf32>
    tpu.vector_store %arg6[%c0_78, %c0_79], %130 {strides = array<i32>} : memref<16x4xf32, #tpu.memory_space<vmem>>, vector<16x4xf32>,
    return
  }
}

</mosaic_0001>

<bundles_post_ra>
// kernel: model_forward.1
= control target key start
LH: loop header
LB: loop body
LE: loop exit
PB: predicated region body
PF: predicated region fallthrough
CT: control target
= control target key end

     0   :  { %vm70_vm0 = vcmask 261120   ;;  %vm103_vm1 = vcmask 130048   ;;  %vm30_vm2 = vcmask 64512   ;;  %vm1277_vm11 = vcmask 31744   ;;  %s1761_s3 = inlined_call_operand.vmem [shape: f32[32,32], index: 3, kind: input, shape index: {}]   ;;  %s1762_s4 = inlined_call_operand.vmem [shape: f32[16,16], index: 4, kind: input, shape index: {}]   ;;  %s1763_s1 = inlined_call_operand.vmem [shape: f32[8,32], index: 1, kind: input, shape index: {}]   ;;  %s1764_s0 = inlined_call_operand.vmem [shape: f32[16,8], index: 0, kind: input, shape index: {}]   ;;  %s1765_s2 = inlined_call_operand.vmem [shape: f32[1,32], index: 2, kind: input, shape index: {}]   ;;  %s1766_s5 = inlined_call_operand.vmem [shape: f32[32,4], index: 5, kind: input, shape index: {}]   ;;  %s1767_s6 = inlined_call_operand.vmem [shape: f32[16,4], index: 6, kind: output, shape index: {}]  }
   0x1   :  { %v1426_v0 = vld [vmem:[%s1761_s3] sm:$0xff]  ;;  %v1431_v1 = vld [vmem:[%s1761_s3 + $0x8] sm:$0xff]  ;;  %v1436_v2 = vld [vmem:[%s1761_s3 + $0x10] sm:$0xff] }
   0x2   :  { %v1441_v3 = vld [vmem:[%s1761_s3 + $0x18] sm:$0xff]  ;;  %v66_v4 = vmul.f32 %v1426_v0, %v1426_v0  ;;  %v67_v5 = vmul.f32 %v1431_v1, %v1431_v1  ;;  %v68_v6 = vmul.f32 %v1436_v2, %v1436_v2  ;;  %v1457_v12 = vld [vmem:[%s1762_s4] sm:$0xff]  ;;  %v1462_v13 = vld [vmem:[%s1762_s4 + $0x8] sm:$0xff] }
   0x3   :  { %v69_v7 = vmul.f32 %v1441_v3, %v1441_v3  ;;  %v101_v16 = vmul.f32 %v1457_v12, %v1457_v12  ;;  %v102_v17 = vmul.f32 %v1462_v13, %v1462_v13  ;;  %v25_v22 = vld [vmem:[%s1763_s1] sm:$0xff]  ;;  %v24_v23 = vld [vmem:[%s1764_s0 + $0x8] sm:$0xff] }
   0x4   :  { %v71_v8 = vsel %vm70_vm0, %v66_v4, 0.0  ;;  %v72_v9 = vsel %vm70_vm0, %v67_v5, 0.0  ;;  %v74_v10 = vsel %vm70_vm0, %v68_v6, 0.0  ;;  %v23_v24 = vld [vmem:[%s1764_s0] sm:$0xff]  ;;  %1368 = vmatpush.msra.mxu2 %v25_v22  ;;  %52 = vmatpush.msra.mxu0 %v25_v22 }
   0x5   :  { %v73_v11 = vadd.f32 %v72_v9, %v71_v8  ;;  %v76_v14 = vsel %vm70_vm0, %v69_v7, 0.0  ;;  %v104_v19 = vsel %vm103_vm1, %v101_v16, 0.0  ;;  %v105_v20 = vsel %vm103_vm1, %v102_v17, 0.0  ;;  %1285 = vmatmul.msk.f32.vlgmr.msra.gmra.mxu2 %vm30_vm2, %v24_v23  ;;  %1284 = vmatmul.msk.f32.vlgmr.msra.gmra.mxu0 %vm30_vm2, %v23_v24  ;;  %v1381_v50 = vld [vmem:[%s1765_s2] ss:$0 sm:$0xff] }
   0x6   :  { %v106_v21 = vadd.f32 %v105_v20, %v104_v19 }
   0x7   :  { %v75_v15 = vadd.f32 %v74_v10, %v73_v11 }
   0x9   :  { %v77_v18 = vadd.f32 %v76_v14, %v75_v15 }
   0xb   :  { %78 = vadd.xlane.f32.xlu0 %v77_v18 }
  0x13   :  { %107 = vadd.xlane.f32.xlu0 %v106_v21 }
  0x7e   :  { %v79_v25 = vpop.xlane.xlu0 %78 }
  0x7f   :  { %v80_v26 = vrot.slane %v79_v25, 4 }
  0x81   :  { %v81_v27 = vadd.f32 %v80_v26, %v79_v25 }
  0x82   :  { %v54_v53 = vpop.f32.mrf.mxu0 }
  0x83   :  { %v82_v28 = vrot.slane %v81_v27, 2  ;;  %v1486_v55 = vadd.f32 %v1381_v50, %v54_v53 }
  0x85   :  { %v83_v29 = vadd.f32 %v82_v28, %v81_v27  ;;  %v154_v56 = vmax.f32 %v1486_v55, 0.0 }
  0x86   :  { %v108_v32 = vpop.xlane.xlu0 %107 }
  0x87   :  { %v84_v30 = vrot.slane %v83_v29, 1  ;;  %v109_v34 = vrot.slane %v108_v32, 4 }
  0x88   :  { %v57_v51 = vpop.f32.mrf.mxu2 }
  0x89   :  { %v85_v31 = vadd.f32 %v84_v30, %v83_v29  ;;  %v110_v35 = vadd.f32 %v109_v34, %v108_v32  ;;  %v1483_v52 = vadd.f32 %v1381_v50, %v57_v51 }
  0x8b   :  { %1371 = vpush %v85_v31  ;;  %v111_v38 = vrot.slane %v110_v35, 2  ;;  %v155_v54 = vmax.f32 %v1483_v52, 0.0 }
  0x8d   :  { %v112_v41 = vadd.f32 %v111_v38, %v110_v35  ;;  %176 = vmatpush.msra.mxu1 %v155_v54  ;;  %1369 = vmatpush.msra.mxu3 %v155_v54 }
  0x8f   :  { %v113_v44 = vrot.slane %v112_v41, 1  ;;  %177 = vmatpush.msra.mxu1 %v154_v56  ;;  %1370 = vmatpush.msra.mxu3 %v154_v56 }
  0x90   :  { %1286 = vmatmul.msk.f32.vlgmr.msra.gmra.mxu1 %vm103_vm1, %v1457_v12  ;;  %1287 = vmatmul.msk.f32.vlgmr.msra.gmra.mxu3 %vm103_vm1, %v1462_v13 }
  0x91   :  { %v114_v49 = vadd.f32 %v113_v44, %v112_v41 }
  0xbc   :  { %s1372_s1 = spop %1371 }
  0xbd   :  { %v87_v33 = vstv %s1372_s1 }
  0xbe   :  { %1382 = vrsqrt.f32 %v87_v33  ;;  %vm95_vm3 = vcmp.eq.f32.partialorder %v87_v33, inf  ;;  %v98_v46 = vand.u32 2147483648, %v87_v33  ;;  %vm97_vm4 = vcmp.eq.f32.partialorder %v87_v33, 0.0 }
  0xc4   :  { %v1383_v36 = vpop.eup %1382 }
  0xc5   :  { %v89_v37 = vmul.f32 %v1383_v36, %v87_v33 }
  0xc7   :  { %v90_v39 = vmul.f32 %v1383_v36, %v89_v37 }
  0xc9   :  { %v91_v40 = vmul.f32 0.5, %v90_v39 }
  0xcb   :  { %v92_v42 = vsub.f32 1.5, %v91_v40 }
  0xcd   :  { %v93_v43 = vmul.f32 %v1383_v36, %v92_v42 }
  0xcf   :  { %v94_v45 = vmul.f32 %v93_v43, %v87_v33 }
  0xd1   :  { %v96_v47 = vsel %vm95_vm3, %v87_v33, %v94_v45 }
  0xd2   :  { %v99_v48 = vsel %vm97_vm4, %v98_v46, %v96_v47 }
  0xd3   :  { %1373 = vpush %v99_v48 }
  0xd4   :  { %1375 = vpush %v114_v49 }
 0x104   :  { %s1374_s2 = spop %1373 }
 0x105   :  { %s1376_s14 = spop %1375 }
 0x106   :  { %v116_v57 = vstv %s1376_s14 }
 0x107   :  { %1384 = vrsqrt.f32 %v116_v57  ;;  %vm124_vm5 = vcmp.eq.f32.partialorder %v116_v57, inf  ;;  %v127_v5 = vand.u32 2147483648, %v116_v57  ;;  %vm126_vm6 = vcmp.eq.f32.partialorder %v116_v57, 0.0 }
 0x10d   :  { %v1385_v58 = vpop.eup %1384 }
 0x10e   :  { %v118_v59 = vmul.f32 %v1385_v58, %v116_v57 }
 0x110   :  { %v119_v60 = vmul.f32 %v1385_v58, %v118_v59 }
 0x112   :  { %v120_v61 = vmul.f32 0.5, %v119_v60 }
 0x114   :  { %v121_v62 = vsub.f32 1.5, %v120_v61 }
 0x116   :  { %v122_v63 = vmul.f32 %v1385_v58, %v121_v62 }
 0x118   :  { %v123_v4 = vmul.f32 %v122_v63, %v116_v57 }
 0x11a   :  { %v125_v6 = vsel %vm124_vm5, %v116_v57, %v123_v4 }
 0x11b   :  { %v128_v7 = vsel %vm126_vm6, %v127_v5, %v125_v6 }
 0x11c   :  { %1377 = vpush %v128_v7 }
 0x14d   :  { %s1378_s15 = spop %1377 }
 0x14e   :  { %s130_s16 = smul.f32 %s1378_s15, %s1374_s2 }
 0x150   :  { %s131_s17 = sadd.f32 1e-06, %s130_s16 }
 0x152   :  { %v132_v8 = vstv %s131_s17 }
 0x153   :  { %1386 = vrcp.f32 %v132_v8  ;;  %v144_v14 = vand.u32 2147483648, %v132_v8  ;;  %v142_v16 = vand.u32 2147483647, %v132_v8  ;;  %vm138_vm8 = vweird.f32 %v132_v8 }
 0x155   :  { %v145_v18 = vor.u32 1.1754944e-38, %v144_v14  ;;  %vm143_vm10 = vcmp.eq.f32.partialorder %v142_v16, 8.507059e+37 }
 0x159   :  { %v1387_v9 = vpop.eup %1386 }
 0x15a   :  { %v134_v10 = vmul.f32 %v1387_v9, %v132_v8  ;;  %vm139_vm7 = vweird.f32 %v1387_v9 }
 0x15b   :  { %vm140_vm9 = vmor %vm138_vm8, %vm139_vm7 }
 0x15c   :  { %v135_v11 = vsub.f32 1.0, %v134_v10 }
 0x15e   :  { %v136_v15 = vmul.f32 %v1387_v9, %v135_v11 }
 0x160   :  { %v137_v17 = vadd.f32 %v1387_v9, %v136_v15 }
 0x162   :  { %v141_v19 = vsel %vm140_vm9, %v1387_v9, %v137_v17 }
 0x163   :  { %v146_v20 = vsel %vm143_vm10, %v145_v18, %v141_v19 }
 0x164   :  { %1379 = vpush %v146_v20 }
 0x195   :  { %s1380_s18 = spop %1379 }
 0x196   :  { %s148_s19 = smul.f32 0.9, %s1380_s18 }
 0x198   :  { %v149_v21 = vstv %s148_s19 }
 0x199   :  { %v1494_v22 = vmul.f32 %v149_v21, %v1441_v3  ;;  %v1497_v23 = vmul.f32 %v149_v21, %v1436_v2  ;;  %v1502_v24 = vmul.f32 %v149_v21, %v1431_v1  ;;  %v1507_v25 = vmul.f32 %v149_v21, %v1426_v0  ;;  %v179_v2 = vpop.f32.mrf.mxu1  ;;  %v182_v1 = vpop.f32.mrf.mxu3 }
 0x19b   :  { %203 = vmatpush.msrb.mxu2 %v1494_v22  ;;  %257 = vmatpush.msrb.mxu0 %v1494_v22 }
 0x19d   :  { %204 = vmatpush.msrb.mxu2 %v1497_v23  ;;  %258 = vmatpush.msrb.mxu0 %v1497_v23 }
 0x19f   :  { %205 = vmatpush.msrb.mxu2 %v1502_v24  ;;  %259 = vmatpush.msrb.mxu0 %v1502_v24 }
 0x1a1   :  { %206 = vmatpush.msrb.mxu2 %v1507_v25  ;;  %260 = vmatpush.msrb.mxu0 %v1507_v25 }
 0x1a2   :  { %1288 = vmatmul.msk.f32.vlgmr.msrb.gmra.mxu2 %vm70_vm0, %v179_v2 }
 0x1a3   :  { %365 = vmatpush.msra.mxu0 %v1494_v22 }
 0x1a5   :  { %366 = vmatpush.msra.mxu0 %v1497_v23 }
 0x1a7   :  { %367 = vmatpush.msra.mxu0 %v1502_v24 }
 0x1a9   :  { %368 = vmatpush.msra.mxu0 %v1507_v25 }
 0x1aa   :  { %1289 = vmatmul.msk.f32.gmra.mxu2 %vm70_vm0, %v182_v1 }
 0x225   :  { %v208_v0 = vpop.f32.mrf.mxu2 }
 0x226   :  { %v209_v26 = vadd.f32 %v208_v0, %v1486_v55 }
 0x228   :  { %v214_v29 = vmax.f32 %v209_v26, 0.0 }
 0x22d   :  { %v211_v3 = vpop.f32.mrf.mxu2 }
 0x22e   :  { %v212_v27 = vadd.f32 %v211_v3, %v1483_v52 }
 0x230   :  { %v215_v28 = vmax.f32 %v212_v27, 0.0 }
 0x232   :  { %230 = vmatpush.msrb.mxu3 %v215_v28 }
 0x234   :  { %231 = vmatpush.msrb.mxu3 %v214_v29 }
 0x235   :  { %1290 = vmatmul.msk.f32.vlgmr.msrb.gmra.mxu3 %vm103_vm1, %v1457_v12 }
 0x236   :  { %311 = vmatpush.msra.mxu3 %v1494_v22 }
 0x238   :  { %312 = vmatpush.msra.mxu3 %v1497_v23 }
 0x23a   :  { %313 = vmatpush.msra.mxu3 %v1502_v24 }
 0x23c   :  { %314 = vmatpush.msra.mxu3 %v1507_v25 }
 0x23d   :  { %1291 = vmatmul.msk.f32.gmra.mxu3 %vm103_vm1, %v1462_v13 }
 0x23e   :  { %419 = vmatpush.msrb.mxu3 %v1494_v22 }
 0x240   :  { %420 = vmatpush.msrb.mxu3 %v1497_v23 }
 0x242   :  { %421 = vmatpush.msrb.mxu3 %v1502_v24 }
 0x244   :  { %422 = vmatpush.msrb.mxu3 %v1507_v25 }
 0x2b8   :  { %v233_v30 = vpop.f32.mrf.mxu3 }
 0x2b9   :  { %1292 = vmatmul.msk.f32.vlgmr.msrb.gmra.mxu0 %vm70_vm0, %v233_v30 }
 0x2ba   :  { %473 = vmatpush.msrb.mxu0 %v1494_v22 }
 0x2bc   :  { %474 = vmatpush.msrb.mxu0 %v1497_v23 }
 0x2be   :  { %475 = vmatpush.msrb.mxu0 %v1502_v24 }
 0x2c0   :  { %476 = vmatpush.msrb.mxu0 %v1507_v25  ;;  %v236_v31 = vpop.f32.mrf.mxu3 }
 0x2c1   :  { %1293 = vmatmul.msk.f32.gmra.mxu0 %vm70_vm0, %v236_v31 }
 0x336   :  { %v262_v32 = vpop.f32.mrf.mxu0 }
 0x337   :  { %v263_v34 = vadd.f32 %v262_v32, %v1486_v55 }
 0x339   :  { %v268_v37 = vmax.f32 %v263_v34, 0.0 }
 0x33e   :  { %v265_v33 = vpop.f32.mrf.mxu0 }
 0x33f   :  { %v266_v35 = vadd.f32 %v265_v33, %v1483_v52 }
 0x341   :  { %v269_v36 = vmax.f32 %v266_v35, 0.0 }
 0x343   :  { %284 = vmatpush.msrb.mxu1 %v269_v36 }
 0x345   :  { %285 = vmatpush.msrb.mxu1 %v268_v37 }
 0x346   :  { %1294 = vmatmul.msk.f32.vlgmr.msrb.gmra.mxu1 %vm103_vm1, %v1457_v12 }
 0x34e   :  { %1295 = vmatmul.msk.f32.gmra.mxu1 %vm103_vm1, %v1462_v13 }
 0x3c3   :  { %v287_v38 = vpop.f32.mrf.mxu1 }
 0x3c4   :  { %1296 = vmatmul.msk.f32.vlgmr.msra.gmra.mxu3 %vm70_vm0, %v287_v38 }
 0x3c5   :  { %527 = vmatpush.msra.mxu3 %v1494_v22 }
 0x3c7   :  { %528 = vmatpush.msra.mxu3 %v1497_v23 }
 0x3c9   :  { %529 = vmatpush.msra.mxu3 %v1502_v24 }
 0x3cb   :  { %530 = vmatpush.msra.mxu3 %v1507_v25  ;;  %v290_v39 = vpop.f32.mrf.mxu1 }
 0x3cc   :  { %1297 = vmatmul.msk.f32.gmra.mxu3 %vm70_vm0, %v290_v39 }
 0x447   :  { %v316_v40 = vpop.f32.mrf.mxu3 }
 0x448   :  { %v317_v42 = vadd.f32 %v316_v40, %v1486_v55 }
 0x44a   :  { %v322_v45 = vmax.f32 %v317_v42, 0.0 }
 0x44f   :  { %v319_v41 = vpop.f32.mrf.mxu3 }
 0x450   :  { %v320_v43 = vadd.f32 %v319_v41, %v1483_v52 }
 0x452   :  { %v323_v44 = vmax.f32 %v320_v43, 0.0 }
 0x454   :  { %338 = vmatpush.msra.mxu2 %v323_v44 }
 0x456   :  { %339 = vmatpush.msra.mxu2 %v322_v45 }
 0x457   :  { %1298 = vmatmul.msk.f32.vlgmr.msra.gmra.mxu2 %vm103_vm1, %v1457_v12 }
 0x45f   :  { %1299 = vmatmul.msk.f32.gmra.mxu2 %vm103_vm1, %v1462_v13 }
 0x4da   :  { %v341_v46 = vpop.f32.mrf.mxu2 }
 0x4db   :  { %1300 = vmatmul.msk.f32.vlgmr.msra.gmra.mxu0 %vm70_vm0, %v341_v46 }
 0x4dc   :  { %581 = vmatpush.msra.mxu0 %v1494_v22 }
 0x4de   :  { %582 = vmatpush.msra.mxu0 %v1497_v23 }
 0x4e0   :  { %583 = vmatpush.msra.mxu0 %v1502_v24 }
 0x4e2   :  { %584 = vmatpush.msra.mxu0 %v1507_v25  ;;  %v344_v47 = vpop.f32.mrf.mxu2 }
 0x4e3   :  { %1301 = vmatmul.msk.f32.gmra.mxu0 %vm70_vm0, %v344_v47 }
 0x558   :  { %v370_v48 = vpop.f32.mrf.mxu0 }
 0x559   :  { %v371_v50 = vadd.f32 %v370_v48, %v1486_v55 }
 0x55b   :  { %v376_v54 = vmax.f32 %v371_v50, 0.0 }
 0x560   :  { %v373_v49 = vpop.f32.mrf.mxu0 }
 0x561   :  { %v374_v51 = vadd.f32 %v373_v49, %v1483_v52 }
 0x563   :  { %v377_v53 = vmax.f32 %v374_v51, 0.0 }
 0x565   :  { %392 = vmatpush.msra.mxu1 %v377_v53 }
 0x567   :  { %393 = vmatpush.msra.mxu1 %v376_v54 }
 0x568   :  { %1302 = vmatmul.msk.f32.vlgmr.msra.gmra.mxu1 %vm103_vm1, %v1457_v12 }
 0x570   :  { %1303 = vmatmul.msk.f32.gmra.mxu1 %vm103_vm1, %v1462_v13 }
 0x5e5   :  { %v395_v56 = vpop.f32.mrf.mxu1 }
 0x5e6   :  { %1304 = vmatmul.msk.f32.vlgmr.msrb.gmra.mxu3 %vm70_vm0, %v395_v56 }
 0x5e7   :  { %635 = vmatpush.msrb.mxu3 %v1494_v22 }
 0x5e9   :  { %636 = vmatpush.msrb.mxu3 %v1497_v23 }
 0x5eb   :  { %637 = vmatpush.msrb.mxu3 %v1502_v24 }
 0x5ed   :  { %638 = vmatpush.msrb.mxu3 %v1507_v25  ;;  %v398_v57 = vpop.f32.mrf.mxu1 }
 0x5ee   :  { %1305 = vmatmul.msk.f32.gmra.mxu3 %vm70_vm0, %v398_v57 }
 0x669   :  { %v424_v58 = vpop.f32.mrf.mxu3 }
 0x66a   :  { %v425_v60 = vadd.f32 %v424_v58, %v1486_v55 }
 0x66c   :  { %v430_v63 = vmax.f32 %v425_v60, 0.0 }
 0x671   :  { %v427_v59 = vpop.f32.mrf.mxu3 }
 0x672   :  { %v428_v61 = vadd.f32 %v427_v59, %v1483_v52 }
 0x674   :  { %v431_v62 = vmax.f32 %v428_v61, 0.0 }
 0x676   :  { %446 = vmatpush.msrb.mxu2 %v431_v62 }
 0x678   :  { %447 = vmatpush.msrb.mxu2 %v430_v63 }
 0x679   :  { %1306 = vmatmul.msk.f32.vlgmr.msrb.gmra.mxu2 %vm103_vm1, %v1457_v12 }
 0x681   :  { %1307 = vmatmul.msk.f32.gmra.mxu2 %vm103_vm1, %v1462_v13 }
 0x6fc   :  { %v449_v4 = vpop.f32.mrf.mxu2 }
 0x6fd   :  { %1308 = vmatmul.msk.f32.vlgmr.msrb.gmra.mxu0 %vm70_vm0, %v449_v4 }
 0x6fe   :  { %689 = vmatpush.msrb.mxu0 %v1494_v22 }
 0x700   :  { %690 = vmatpush.msrb.mxu0 %v1497_v23 }
 0x702   :  { %691 = vmatpush.msrb.mxu0 %v1502_v24 }
 0x704   :  { %692 = vmatpush.msrb.mxu0 %v1507_v25  ;;  %v452_v5 = vpop.f32.mrf.mxu2 }
 0x705   :  { %1309 = vmatmul.msk.f32.gmra.mxu0 %vm70_vm0, %v452_v5 }
 0x77a   :  { %v478_v6 = vpop.f32.mrf.mxu0 }
 0x77b   :  { %v479_v8 = vadd.f32 %v478_v6, %v1486_v55 }
 0x77d   :  { %v484_v11 = vmax.f32 %v479_v8, 0.0 }
 0x782   :  { %v481_v7 = vpop.f32.mrf.mxu0 }
 0x783   :  { %v482_v9 = vadd.f32 %v481_v7, %v1483_v52 }
 0x785   :  { %v485_v10 = vmax.f32 %v482_v9, 0.0 }
 0x787   :  { %500 = vmatpush.msrb.mxu1 %v485_v10 }
 0x789   :  { %501 = vmatpush.msrb.mxu1 %v484_v11 }
 0x78a   :  { %1310 = vmatmul.msk.f32.vlgmr.msrb.gmra.mxu1 %vm103_vm1, %v1457_v12 }
 0x792   :  { %1311 = vmatmul.msk.f32.gmra.mxu1 %vm103_vm1, %v1462_v13 }
 0x807   :  { %v503_v14 = vpop.f32.mrf.mxu1 }
 0x808   :  { %1312 = vmatmul.msk.f32.vlgmr.msra.gmra.mxu3 %vm70_vm0, %v503_v14 }
 0x809   :  { %743 = vmatpush.msra.mxu3 %v1494_v22 }
 0x80b   :  { %744 = vmatpush.msra.mxu3 %v1497_v23 }
 0x80d   :  { %745 = vmatpush.msra.mxu3 %v1502_v24 }
 0x80f   :  { %746 = vmatpush.msra.mxu3 %v1507_v25  ;;  %v506_v15 = vpop.f32.mrf.mxu1 }
 0x810   :  { %1313 = vmatmul.msk.f32.gmra.mxu3 %vm70_vm0, %v506_v15 }
 0x88b   :  { %v532_v16 = vpop.f32.mrf.mxu3 }
 0x88c   :  { %v533_v18 = vadd.f32 %v532_v16, %v1486_v55 }
 0x88e   :  { %v538_v21 = vmax.f32 %v533_v18, 0.0 }
 0x893   :  { %v535_v17 = vpop.f32.mrf.mxu3 }
 0x894   :  { %v536_v19 = vadd.f32 %v535_v17, %v1483_v52 }
 0x896   :  { %v539_v20 = vmax.f32 %v536_v19, 0.0 }
 0x898   :  { %554 = vmatpush.msra.mxu2 %v539_v20 }
 0x89a   :  { %555 = vmatpush.msra.mxu2 %v538_v21 }
 0x89b   :  { %1314 = vmatmul.msk.f32.vlgmr.msra.gmra.mxu2 %vm103_vm1, %v1457_v12 }
 0x8a3   :  { %1315 = vmatmul.msk.f32.gmra.mxu2 %vm103_vm1, %v1462_v13 }
 0x91e   :  { %v557_v2 = vpop.f32.mrf.mxu2 }
 0x91f   :  { %1316 = vmatmul.msk.f32.vlgmr.msra.gmra.mxu0 %vm70_vm0, %v557_v2 }
 0x920   :  { %797 = vmatpush.msra.mxu0 %v1494_v22 }
 0x922   :  { %798 = vmatpush.msra.mxu0 %v1497_v23 }
 0x924   :  { %799 = vmatpush.msra.mxu0 %v1502_v24 }
 0x926   :  { %800 = vmatpush.msra.mxu0 %v1507_v25  ;;  %v560_v1 = vpop.f32.mrf.mxu2 }
 0x927   :  { %1317 = vmatmul.msk.f32.gmra.mxu0 %vm70_vm0, %v560_v1 }
 0x99c   :  { %v586_v0 = vpop.f32.mrf.mxu0 }
 0x99d   :  { %v587_v26 = vadd.f32 %v586_v0, %v1486_v55 }
 0x99f   :  { %v592_v29 = vmax.f32 %v587_v26, 0.0 }
 0x9a4   :  { %v589_v3 = vpop.f32.mrf.mxu0 }
 0x9a5   :  { %v590_v27 = vadd.f32 %v589_v3, %v1483_v52 }
 0x9a7   :  { %v593_v28 = vmax.f32 %v590_v27, 0.0 }
 0x9a9   :  { %608 = vmatpush.msra.mxu1 %v593_v28 }
 0x9ab   :  { %609 = vmatpush.msra.mxu1 %v592_v29 }
 0x9ac   :  { %1318 = vmatmul.msk.f32.vlgmr.msra.gmra.mxu1 %vm103_vm1, %v1457_v12 }
 0x9b4   :  { %1319 = vmatmul.msk.f32.gmra.mxu1 %vm103_vm1, %v1462_v13 }
 0xa29   :  { %v611_v30 = vpop.f32.mrf.mxu1 }
 0xa2a   :  { %1320 = vmatmul.msk.f32.vlgmr.msrb.gmra.mxu3 %vm70_vm0, %v611_v30 }
 0xa2b   :  { %851 = vmatpush.msrb.mxu3 %v1494_v22 }
 0xa2d   :  { %852 = vmatpush.msrb.mxu3 %v1497_v23 }
 0xa2f   :  { %853 = vmatpush.msrb.mxu3 %v1502_v24 }
 0xa31   :  { %854 = vmatpush.msrb.mxu3 %v1507_v25  ;;  %v614_v31 = vpop.f32.mrf.mxu1 }
 0xa32   :  { %1321 = vmatmul.msk.f32.gmra.mxu3 %vm70_vm0, %v614_v31 }
 0xaad   :  { %v640_v32 = vpop.f32.mrf.mxu3 }
 0xaae   :  { %v641_v34 = vadd.f32 %v640_v32, %v1486_v55 }
 0xab0   :  { %v646_v37 = vmax.f32 %v641_v34, 0.0 }
 0xab5   :  { %v643_v33 = vpop.f32.mrf.mxu3 }
 0xab6   :  { %v644_v35 = vadd.f32 %v643_v33, %v1483_v52 }
 0xab8   :  { %v647_v36 = vmax.f32 %v644_v35, 0.0 }
 0xaba   :  { %662 = vmatpush.msrb.mxu2 %v647_v36 }
 0xabc   :  { %663 = vmatpush.msrb.mxu2 %v646_v37 }
 0xabd   :  { %1322 = vmatmul.msk.f32.vlgmr.msrb.gmra.mxu2 %vm103_vm1, %v1457_v12 }
 0xac5   :  { %1323 = vmatmul.msk.f32.gmra.mxu2 %vm103_vm1, %v1462_v13 }
 0xb40   :  { %v665_v38 = vpop.f32.mrf.mxu2 }
 0xb41   :  { %1324 = vmatmul.msk.f32.vlgmr.msrb.gmra.mxu0 %vm70_vm0, %v665_v38 }
 0xb42   :  { %905 = vmatpush.msrb.mxu0 %v1494_v22 }
 0xb44   :  { %906 = vmatpush.msrb.mxu0 %v1497_v23 }
 0xb46   :  { %907 = vmatpush.msrb.mxu0 %v1502_v24 }
 0xb48   :  { %908 = vmatpush.msrb.mxu0 %v1507_v25  ;;  %v668_v39 = vpop.f32.mrf.mxu2 }
 0xb49   :  { %1325 = vmatmul.msk.f32.gmra.mxu0 %vm70_vm0, %v668_v39 }
 0xbbe   :  { %v694_v40 = vpop.f32.mrf.mxu0 }
 0xbbf   :  { %v695_v42 = vadd.f32 %v694_v40, %v1486_v55 }
 0xbc1   :  { %v700_v45 = vmax.f32 %v695_v42, 0.0 }
 0xbc6   :  { %v697_v41 = vpop.f32.mrf.mxu0 }
 0xbc7   :  { %v698_v43 = vadd.f32 %v697_v41, %v1483_v52 }
 0xbc9   :  { %v701_v44 = vmax.f32 %v698_v43, 0.0 }
 0xbcb   :  { %716 = vmatpush.msrb.mxu1 %v701_v44 }
 0xbcd   :  { %717 = vmatpush.msrb.mxu1 %v700_v45 }
 0xbce   :  { %1326 = vmatmul.msk.f32.vlgmr.msrb.gmra.mxu1 %vm103_vm1, %v1457_v12 }
 0xbd6   :  { %1327 = vmatmul.msk.f32.gmra.mxu1 %vm103_vm1, %v1462_v13 }
 0xc4b   :  { %v719_v46 = vpop.f32.mrf.mxu1 }
 0xc4c   :  { %1328 = vmatmul.msk.f32.vlgmr.msra.gmra.mxu3 %vm70_vm0, %v719_v46 }
 0xc4d   :  { %959 = vmatpush.msra.mxu3 %v1494_v22 }
 0xc4f   :  { %960 = vmatpush.msra.mxu3 %v1497_v23 }
 0xc51   :  { %961 = vmatpush.msra.mxu3 %v1502_v24 }
 0xc53   :  { %962 = vmatpush.msra.mxu3 %v1507_v25  ;;  %v722_v47 = vpop.f32.mrf.mxu1 }
 0xc54   :  { %1329 = vmatmul.msk.f32.gmra.mxu3 %vm70_vm0, %v722_v47 }
 0xccf   :  { %v748_v48 = vpop.f32.mrf.mxu3 }
 0xcd0   :  { %v749_v50 = vadd.f32 %v748_v48, %v1486_v55 }
 0xcd2   :  { %v754_v54 = vmax.f32 %v749_v50, 0.0 }
 0xcd7   :  { %v751_v49 = vpop.f32.mrf.mxu3 }
 0xcd8   :  { %v752_v51 = vadd.f32 %v751_v49, %v1483_v52 }
 0xcda   :  { %v755_v53 = vmax.f32 %v752_v51, 0.0 }
 0xcdc   :  { %770 = vmatpush.msra.mxu2 %v755_v53 }
 0xcde   :  { %771 = vmatpush.msra.mxu2 %v754_v54 }
 0xcdf   :  { %1330 = vmatmul.msk.f32.vlgmr.msra.gmra.mxu2 %vm103_vm1, %v1457_v12 }
 0xce7   :  { %1331 = vmatmul.msk.f32.gmra.mxu2 %vm103_vm1, %v1462_v13 }
 0xd62   :  { %v773_v56 = vpop.f32.mrf.mxu2 }
 0xd63   :  { %1332 = vmatmul.msk.f32.vlgmr.msra.gmra.mxu0 %vm70_vm0, %v773_v56 }
 0xd64   :  { %1013 = vmatpush.msra.mxu0 %v1494_v22 }
 0xd66   :  { %1014 = vmatpush.msra.mxu0 %v1497_v23 }
 0xd68   :  { %1015 = vmatpush.msra.mxu0 %v1502_v24 }
 0xd6a   :  { %1016 = vmatpush.msra.mxu0 %v1507_v25  ;;  %v776_v57 = vpop.f32.mrf.mxu2 }
 0xd6b   :  { %1333 = vmatmul.msk.f32.gmra.mxu0 %vm70_vm0, %v776_v57 }
 0xde0   :  { %v802_v58 = vpop.f32.mrf.mxu0 }
 0xde1   :  { %v803_v60 = vadd.f32 %v802_v58, %v1486_v55 }
 0xde3   :  { %v808_v63 = vmax.f32 %v803_v60, 0.0 }
 0xde8   :  { %v805_v59 = vpop.f32.mrf.mxu0 }
 0xde9   :  { %v806_v61 = vadd.f32 %v805_v59, %v1483_v52 }
 0xdeb   :  { %v809_v62 = vmax.f32 %v806_v61, 0.0 }
 0xded   :  { %824 = vmatpush.msra.mxu1 %v809_v62  ;;  %v1247_v62 = vld [vmem:[%s1766_s5 + $0x18] sm:$0xff] }
 0xdef   :  { %825 = vmatpush.msra.mxu1 %v808_v63  ;;  %v1246_v63 = vld [vmem:[%s1766_s5 + $0x10] sm:$0xff] }
 0xdf0   :  { %1334 = vmatmul.msk.f32.vlgmr.msra.gmra.mxu1 %vm103_vm1, %v1457_v12 }
 0xdf8   :  { %1335 = vmatmul.msk.f32.gmra.mxu1 %vm103_vm1, %v1462_v13 }
 0xe6d   :  { %v827_v4 = vpop.f32.mrf.mxu1 }
 0xe6e   :  { %1336 = vmatmul.msk.f32.vlgmr.msrb.gmra.mxu3 %vm70_vm0, %v827_v4 }
 0xe6f   :  { %1067 = vmatpush.msrb.mxu3 %v1494_v22 }
 0xe71   :  { %1068 = vmatpush.msrb.mxu3 %v1497_v23 }
 0xe73   :  { %1069 = vmatpush.msrb.mxu3 %v1502_v24 }
 0xe75   :  { %1070 = vmatpush.msrb.mxu3 %v1507_v25  ;;  %v830_v5 = vpop.f32.mrf.mxu1 }
 0xe76   :  { %1337 = vmatmul.msk.f32.gmra.mxu3 %vm70_vm0, %v830_v5 }
 0xef1   :  { %v856_v6 = vpop.f32.mrf.mxu3 }
 0xef2   :  { %v857_v8 = vadd.f32 %v856_v6, %v1486_v55 }
 0xef4   :  { %v862_v11 = vmax.f32 %v857_v8, 0.0 }
 0xef9   :  { %v859_v7 = vpop.f32.mrf.mxu3 }
 0xefa   :  { %v860_v9 = vadd.f32 %v859_v7, %v1483_v52 }
 0xefc   :  { %v863_v10 = vmax.f32 %v860_v9, 0.0 }
 0xefe   :  { %878 = vmatpush.msrb.mxu2 %v863_v10 }
 0xf00   :  { %879 = vmatpush.msrb.mxu2 %v862_v11 }
 0xf01   :  { %1338 = vmatmul.msk.f32.vlgmr.msrb.gmra.mxu2 %vm103_vm1, %v1457_v12 }
 0xf09   :  { %1339 = vmatmul.msk.f32.gmra.mxu2 %vm103_vm1, %v1462_v13 }
 0xf84   :  { %v881_v14 = vpop.f32.mrf.mxu2 }
 0xf85   :  { %1340 = vmatmul.msk.f32.vlgmr.msrb.gmra.mxu0 %vm70_vm0, %v881_v14 }
 0xf86   :  { %1121 = vmatpush.msrb.mxu0 %v1494_v22 }
 0xf88   :  { %1122 = vmatpush.msrb.mxu0 %v1497_v23 }
 0xf8a   :  { %1123 = vmatpush.msrb.mxu0 %v1502_v24 }
 0xf8c   :  { %1124 = vmatpush.msrb.mxu0 %v1507_v25  ;;  %v884_v15 = vpop.f32.mrf.mxu2 }
 0xf8d   :  { %1341 = vmatmul.msk.f32.gmra.mxu0 %vm70_vm0, %v884_v15 }
0x1002   :  { %v910_v16 = vpop.f32.mrf.mxu0 }
0x1003   :  { %v911_v18 = vadd.f32 %v910_v16, %v1486_v55 }
0x1005   :  { %v916_v21 = vmax.f32 %v911_v18, 0.0 }
0x100a   :  { %v913_v17 = vpop.f32.mrf.mxu0 }
0x100b   :  { %v914_v19 = vadd.f32 %v913_v17, %v1483_v52 }
0x100d   :  { %v917_v20 = vmax.f32 %v914_v19, 0.0 }
0x100f   :  { %932 = vmatpush.msrb.mxu1 %v917_v20 }
0x1011   :  { %933 = vmatpush.msrb.mxu1 %v916_v21 }
0x1012   :  { %1342 = vmatmul.msk.f32.vlgmr.msrb.gmra.mxu1 %vm103_vm1, %v1457_v12 }
0x101a   :  { %1343 = vmatmul.msk.f32.gmra.mxu1 %vm103_vm1, %v1462_v13 }
0x108f   :  { %v935_v2 = vpop.f32.mrf.mxu1 }
0x1090   :  { %1344 = vmatmul.msk.f32.vlgmr.msra.gmra.mxu3 %vm70_vm0, %v935_v2 }
0x1091   :  { %1175 = vmatpush.msra.mxu3 %v1494_v22 }
0x1093   :  { %1176 = vmatpush.msra.mxu3 %v1497_v23 }
0x1095   :  { %1177 = vmatpush.msra.mxu3 %v1502_v24 }
0x1097   :  { %1178 = vmatpush.msra.mxu3 %v1507_v25  ;;  %v938_v1 = vpop.f32.mrf.mxu1 }
0x1098   :  { %1345 = vmatmul.msk.f32.gmra.mxu3 %vm70_vm0, %v938_v1 }
0x1113   :  { %v964_v0 = vpop.f32.mrf.mxu3 }
0x1114   :  { %v965_v26 = vadd.f32 %v964_v0, %v1486_v55 }
0x1116   :  { %v970_v29 = vmax.f32 %v965_v26, 0.0 }
0x111b   :  { %v967_v3 = vpop.f32.mrf.mxu3 }
0x111c   :  { %v968_v27 = vadd.f32 %v967_v3, %v1483_v52 }
0x111e   :  { %v971_v28 = vmax.f32 %v968_v27, 0.0 }
0x1120   :  { %986 = vmatpush.msra.mxu2 %v971_v28 }
0x1122   :  { %987 = vmatpush.msra.mxu2 %v970_v29 }
0x1123   :  { %1346 = vmatmul.msk.f32.vlgmr.msra.gmra.mxu2 %vm103_vm1, %v1457_v12 }
0x112b   :  { %1347 = vmatmul.msk.f32.gmra.mxu2 %vm103_vm1, %v1462_v13 }
0x11a6   :  { %v989_v30 = vpop.f32.mrf.mxu2 }
0x11a7   :  { %1348 = vmatmul.msk.f32.vlgmr.msra.gmra.mxu0 %vm70_vm0, %v989_v30 }
0x11a8   :  { %1229 = vmatpush.msra.mxu0 %v1494_v22 }
0x11aa   :  { %1230 = vmatpush.msra.mxu0 %v1497_v23 }
0x11ac   :  { %1231 = vmatpush.msra.mxu0 %v1502_v24 }
0x11ae   :  { %1232 = vmatpush.msra.mxu0 %v1507_v25  ;;  %v992_v31 = vpop.f32.mrf.mxu2 }
0x11af   :  { %1349 = vmatmul.msk.f32.gmra.mxu0 %vm70_vm0, %v992_v31 }
0x1224   :  { %v1018_v32 = vpop.f32.mrf.mxu0 }
0x1225   :  { %v1019_v34 = vadd.f32 %v1018_v32, %v1486_v55 }
0x1227   :  { %v1024_v37 = vmax.f32 %v1019_v34, 0.0 }
0x122c   :  { %v1021_v33 = vpop.f32.mrf.mxu0 }
0x122d   :  { %v1022_v35 = vadd.f32 %v1021_v33, %v1483_v52 }
0x122f   :  { %v1025_v36 = vmax.f32 %v1022_v35, 0.0 }
0x1231   :  { %1040 = vmatpush.msra.mxu1 %v1025_v36 }
0x1233   :  { %1041 = vmatpush.msra.mxu1 %v1024_v37 }
0x1234   :  { %1350 = vmatmul.msk.f32.vlgmr.msra.gmra.mxu1 %vm103_vm1, %v1457_v12 }
0x123c   :  { %1351 = vmatmul.msk.f32.gmra.mxu1 %vm103_vm1, %v1462_v13 }
0x12b1   :  { %v1043_v22 = vpop.f32.mrf.mxu1 }
0x12b2   :  { %1352 = vmatmul.msk.f32.vlgmr.msrb.gmra.mxu3 %vm70_vm0, %v1043_v22 }
0x12b9   :  { %v1046_v23 = vpop.f32.mrf.mxu1 }
0x12ba   :  { %1353 = vmatmul.msk.f32.gmra.mxu3 %vm70_vm0, %v1046_v23 }
0x1335   :  { %v1072_v24 = vpop.f32.mrf.mxu3 }
0x1336   :  { %v1073_v38 = vadd.f32 %v1072_v24, %v1486_v55 }
0x1338   :  { %v1078_v41 = vmax.f32 %v1073_v38, 0.0 }
0x133d   :  { %v1075_v25 = vpop.f32.mrf.mxu3 }
0x133e   :  { %v1076_v39 = vadd.f32 %v1075_v25, %v1483_v52 }
0x1340   :  { %v1079_v40 = vmax.f32 %v1076_v39, 0.0 }
0x1342   :  { %1094 = vmatpush.msrb.mxu2 %v1079_v40 }
0x1344   :  { %1095 = vmatpush.msrb.mxu2 %v1078_v41 }
0x1345   :  { %1354 = vmatmul.msk.f32.vlgmr.msrb.gmra.mxu2 %vm103_vm1, %v1457_v12 }
0x134d   :  { %1355 = vmatmul.msk.f32.gmra.mxu2 %vm103_vm1, %v1462_v13 }
0x13c8   :  { %v1097_v42 = vpop.f32.mrf.mxu2 }
0x13c9   :  { %1356 = vmatmul.msk.f32.vlgmr.msrb.gmra.mxu0 %vm70_vm0, %v1097_v42 }
0x13d0   :  { %v1100_v43 = vpop.f32.mrf.mxu2 }
0x13d1   :  { %1357 = vmatmul.msk.f32.gmra.mxu0 %vm70_vm0, %v1100_v43 }
0x1446   :  { %v1126_v44 = vpop.f32.mrf.mxu0 }
0x1447   :  { %v1127_v46 = vadd.f32 %v1126_v44, %v1486_v55 }
0x1449   :  { %v1132_v49 = vmax.f32 %v1127_v46, 0.0 }
0x144e   :  { %v1129_v45 = vpop.f32.mrf.mxu0 }
0x144f   :  { %v1130_v47 = vadd.f32 %v1129_v45, %v1483_v52 }
0x1451   :  { %v1133_v48 = vmax.f32 %v1130_v47, 0.0 }
0x1453   :  { %1148 = vmatpush.msrb.mxu1 %v1133_v48 }
0x1455   :  { %1149 = vmatpush.msrb.mxu1 %v1132_v49 }
0x1456   :  { %1358 = vmatmul.msk.f32.vlgmr.msrb.gmra.mxu1 %vm103_vm1, %v1457_v12 }
0x1457   :  { %1266 = vmatpush.msra.mxu1 %v1247_v62 }
0x1459   :  { %1267 = vmatpush.msra.mxu1 %v1246_v63 }
0x145e   :  { %1359 = vmatmul.msk.f32.gmra.mxu1 %vm103_vm1, %v1462_v13 }
0x14d3   :  { %v1151_v50 = vpop.f32.mrf.mxu1 }
0x14d4   :  { %1360 = vmatmul.msk.f32.vlgmr.msra.gmra.mxu3 %vm70_vm0, %v1151_v50 }
0x14db   :  { %v1154_v51 = vpop.f32.mrf.mxu1 }
0x14dc   :  { %1361 = vmatmul.msk.f32.gmra.mxu3 %vm70_vm0, %v1154_v51 }
0x1557   :  { %v1180_v53 = vpop.f32.mrf.mxu3 }
0x1558   :  { %v1181_v56 = vadd.f32 %v1180_v53, %v1486_v55 }
0x155a   :  { %v1186_v59 = vmax.f32 %v1181_v56, 0.0 }
0x155f   :  { %v1183_v54 = vpop.f32.mrf.mxu3 }
0x1560   :  { %v1184_v57 = vadd.f32 %v1183_v54, %v1483_v52 }
0x1562   :  { %v1187_v58 = vmax.f32 %v1184_v57, 0.0 }
0x1564   :  { %1202 = vmatpush.msra.mxu2 %v1187_v58 }
0x1566   :  { %1203 = vmatpush.msra.mxu2 %v1186_v59 }
0x1567   :  { %1362 = vmatmul.msk.f32.vlgmr.msra.gmra.mxu2 %vm103_vm1, %v1457_v12  ;;  %v1245_v12 = vld [vmem:[%s1766_s5 + $0x8] sm:$0xff] }
0x1568   :  { %1268 = vmatpush.msra.mxu1 %v1245_v12 }
0x156f   :  { %1363 = vmatmul.msk.f32.gmra.mxu2 %vm103_vm1, %v1462_v13  ;;  %v1244_v13 = vld [vmem:[%s1766_s5] sm:$0xff] }
0x1570   :  { %1269 = vmatpush.msra.mxu1 %v1244_v13 }
0x15ea   :  { %v1205_v60 = vpop.f32.mrf.mxu2 }
0x15eb   :  { %1364 = vmatmul.msk.f32.vlgmr.msra.gmra.mxu0 %vm70_vm0, %v1205_v60 }
0x15f2   :  { %v1208_v61 = vpop.f32.mrf.mxu2 }
0x15f3   :  { %1365 = vmatmul.msk.f32.gmra.mxu0 %vm70_vm0, %v1208_v61 }
0x1668   :  { %v1234_v4 = vpop.f32.mrf.mxu0 }
0x1669   :  { %v1235_v5 = vadd.f32 %v1234_v4, %v1486_v55 }
0x166b   :  { %v1240_v6 = vmax.f32 %v1235_v5, 0.0 }
0x166d   :  { %v1242_v7 = vmax.f32 %v1240_v6, 0.0 }
0x166f   :  { %1366 = vmatmul.msk.f32.vlgmr.msra.gmra.mxu1 %vm70_vm0, %v1242_v7 }
0x1670   :  { %v1237_v8 = vpop.f32.mrf.mxu0 }
0x1671   :  { %v1238_v9 = vadd.f32 %v1237_v8, %v1483_v52 }
0x1673   :  { %v1241_v10 = vmax.f32 %v1238_v9, 0.0 }
0x1675   :  { %v1243_v11 = vmax.f32 %v1241_v10, 0.0 }
0x1677   :  { %1367 = vmatmul.msk.f32.gmra.mxu1 %vm70_vm0, %v1243_v11 }
0x16ec   :  { %v1271_v14 = vpop.f32.mrf.mxu1 }
0x16ed   :  { %1278 = vst.msk [vmem:[%s1767_s6] sm:$0xff] %vm1277_vm11, %v1271_v14 }
0x16f4   :  { %v1274_v15 = vpop.f32.mrf.mxu1 }
0x16f5   :  { %1279 = vst.msk [vmem:[%s1767_s6 + $0x8] sm:$0xff] %vm1277_vm11, %v1274_v15 }

</bundles_post_ra>
